<compile_context>
chip_gen: v7x
topology: tpu7x:2x2x1
jax: 0.10.0
libtpu: 0.0.40
codegen_flags: <defaults>
</compile_context>

<pallas_src>
import functools

import jax
import jax.numpy as jnp
from jax.experimental import pallas as pl
from jax.experimental.pallas import tpu as pltpu


def _round_up(a: int, m: int) -> int:
    return ((a + m - 1) // m) * m


# ----------------------------------------------------------------------------
# Kernel: everything transposed, batch on the lane axis.
# ----------------------------------------------------------------------------
def _cevae_kernel(
    xt_ref,    # (d_in, TILE_B)        bf16   [x ; t_onehot]^T tile (batch on lanes)
    w12_ref,   # (2*hidden, d_in)      bf16   [W1^T ; W2^T] stacked on rows
    b12_ref,   # (2*hidden, 1)         f32    [b1^T ; (b2 + bmu@W2z)^T]
    whz_ref,   # (hidden, hidden)      bf16   (Wmu @ W2z)^T
    w3_ref,    # (d_y_pad, hidden)     bf16   W3^T, rows padded to multiple of 8
    b3_ref,    # (d_y_pad, 1)          f32
    y_ref,     # (d_y_pad, TILE_B)     f32    y^T tile
    *,
    hidden: int,
):
    xt = xt_ref[...]                                                    # (d_in, Tb)

    # One MXU pass for both layer-0 pre-activations (W1 and W2 stacked on M).
    pre = jnp.dot(w12_ref[...], xt,
                  preferred_element_type=jnp.float32) + b12_ref[...]    # (2H, Tb)

    # enc_z.net ReLU
    h1 = jnp.maximum(pre[:hidden], 0.0)                                 # (H, Tb)

    # dec_y layer 0 with enc_z.mu fused:  pre2 + (Wmu@W2z)^T @ h1
    h2 = jnp.maximum(
        pre[hidden:] + jnp.dot(whz_ref[...], h1.astype(whz_ref.dtype),
                               preferred_element_type=jnp.float32),
        0.0)                                                            # (H, Tb)

    # dec_y layer 1 (lane-dense store: batch on lanes, rows padded to 8 only)
    y = jnp.dot(w3_ref[...], h2.astype(w3_ref.dtype),
                preferred_element_type=jnp.float32) + b3_ref[...]       # (d_y_pad, Tb)
    y_ref[...] = y.astype(y_ref.dtype)


# ----------------------------------------------------------------------------
# One-time parameter preparation (hoisted out of the per-call path).
# ----------------------------------------------------------------------------
def prepare_params(params, *, compute_dtype=jnp.bfloat16):
    hidden = params["b1"].shape[-1]
    d_y = params["b3"].shape[-1]

    # Fold the [x, t_onehot] concat into row-concatenated weights.
    # NOTE: zeros_y slice of enc_z.net's weight is dropped -- forward() always
    # concatenates zeros for y, so that slice contributes nothing.
    w1 = jnp.concatenate([params["w1x"], params["w1t"]], axis=0)        # (d_in, H)
    w2 = jnp.concatenate([params["w2x"], params["w2t"]], axis=0)        # (d_in, H)
    d_in = w1.shape[0]

    # Fuse enc_z.mu into dec_y layer 0:  z @ W2z == h1 @ (Wmu @ W2z) + bmu @ W2z
    w_hz = params["wmu"] @ params["w2z"]                                # (H, H)
    b2f = params["b2"] + params["bmu"] @ params["w2z"]                  # (1, H)

    # Output head: pad rows (d_y) to a multiple of 8 sublanes only.
    d_y_pad = _round_up(d_y, 8)
    w3 = jnp.zeros((hidden, d_y_pad), jnp.float32).at[:, :d_y].set(params["w3"])
    b3 = jnp.zeros((1, d_y_pad), jnp.float32).at[:, :d_y].set(params["b3"])

    return {
        "w12T": jnp.concatenate([w1.T, w2.T], axis=0).astype(compute_dtype),  # (2H, d_in)
        "b12T": jnp.concatenate([params["b1"].T, b2f.T], axis=0
                                ).astype(jnp.float32),                        # (2H, 1)
        "whzT": w_hz.T.astype(compute_dtype),                                 # (H, H)
        "w3T": w3.T.astype(compute_dtype),                                    # (d_y_pad, H)
        "b3T": b3.T.astype(jnp.float32),                                      # (d_y_pad, 1)
        "hidden": hidden,
        "d_in": d_in,
        "k": params["w1t"].shape[0],
        "d_y": d_y,
        "d_y_pad": d_y_pad,
    }


def _choose_tile(B: int, tile_b: int):
    """Pick a lane tile (multiple of 128) and the padded batch."""
    b128 = _round_up(max(B, 1), 128)
    tile = max(128, _round_up(tile_b, 128))
    tile = min(tile, b128)
    # Give multi-TensorCore chips (v7x) at least 2 grid steps over the
    # "parallel" batch axis whenever the padded batch allows it; the cost on
    # single-core chips is one extra ~0.35us grid step.
    if b128 >= 256 and b128 // tile < 2:
        tile = max(128, _round_up((b128 + 1) // 2, 128))
    b_pad = _round_up(B, tile)
    return tile, b_pad


# ----------------------------------------------------------------------------
# Forward wrapper.
# ----------------------------------------------------------------------------
def cevae_m_forward(x, t, prepped, *, tile_b: int = 2048):
    """x: (B, d_x) f32, t: (B,) int labels or (B, k) one-hot. Returns (B, d_y) f32."""
    B = x.shape[0]
    d_in = prepped["d_in"]
    k = prepped["k"]
    hidden = prepped["hidden"]
    d_y, d_y_pad = prepped["d_y"], prepped["d_y_pad"]
    compute_dtype = prepped["w12T"].dtype

    # Build the treatment one-hot directly in transposed (k, B) layout.
    if t.ndim == 1:
        t_onehot_T = (jnp.arange(k, dtype=t.dtype)[:, None] == t[None, :]).astype(x.dtype)
    else:
        t_onehot_T = t.T.astype(x.dtype)

    # Activation stream: batch on the lane axis, cast to bf16 once.
    xtT = jnp.concatenate([x.T, t_onehot_T], axis=0).astype(compute_dtype)   # (d_in, B)

    tile, b_pad = _choose_tile(B, tile_b)
    if b_pad != B:
        xtT = jnp.pad(xtT, ((0, 0), (0, b_pad - B)))
    grid = (b_pad // tile,)

    kernel = functools.partial(_cevae_kernel, hidden=hidden)

    def resident(shape):  # weights / biases: same (whole-array) block every step
        return pl.BlockSpec(shape, lambda i: (0, 0))

    yT = pl.pallas_call(
        kernel,
        out_shape=jax.ShapeDtypeStruct((d_y_pad, b_pad), jnp.float32),
        grid=grid,
        in_specs=[
            pl.BlockSpec((d_in, tile), lambda i: (0, i)),     # xt^T: streamed batch tiles
            resident((2 * hidden, d_in)),                     # [W1^T ; W2^T]
            resident((2 * hidden, 1)),                        # [b1^T ; b2'^T]
            resident((hidden, hidden)),                       # (Wmu@W2z)^T
            resident((d_y_pad, hidden)),                      # W3^T
            resident((d_y_pad, 1)),                           # b3^T
        ],
        out_specs=pl.BlockSpec((d_y_pad, tile), lambda i: (0, i)),
        compiler_params=pltpu.CompilerParams(
            dimension_semantics=("parallel",),                # megacore split on v7x
            vmem_limit_bytes=32 * 1024 * 1024,                # headroom on v5e defaults
        ),
    )(xtT, prepped["w12T"], prepped["b12T"], prepped["whzT"],
      prepped["w3T"], prepped["b3T"])

    return yT[:d_y, :B].T


# ----------------------------------------------------------------------------
# Parameter init + pure-JAX reference (mirror the PyTorch module).
# ----------------------------------------------------------------------------
def init_params(key, d_x, d_y, k, d_z, hidden):
    """Deterministic synthetic parameters (shapes match the PyTorch module)."""
    keys = jax.random.split(key, 8)
    scale = 0.1

    # enc_z.net Linear(d_x + d_y + k, hidden); stored as (in, out) so x @ W.
    w1_full = scale * jax.random.normal(keys[0], (d_x + d_y + k, hidden), jnp.float32)
    b1 = scale * jax.random.normal(keys[1], (1, hidden), jnp.float32)
    # enc_z.mu_layer Linear(hidden, d_z)
    wmu = scale * jax.random.normal(keys[2], (hidden, d_z), jnp.float32)
    bmu = scale * jax.random.normal(keys[3], (1, d_z), jnp.float32)
    # dec_y layer 0: Linear(d_x + k + d_z, hidden)
    w2_full = scale * jax.random.normal(keys[4], (d_x + k + d_z, hidden), jnp.float32)
    b2 = scale * jax.random.normal(keys[5], (1, hidden), jnp.float32)
    # dec_y layer 1: Linear(hidden, d_y)
    w3 = scale * jax.random.normal(keys[6], (hidden, d_y), jnp.float32)
    b3 = scale * jax.random.normal(keys[7], (1, d_y), jnp.float32)

    return {
        # W1 input order: [x (d_x), zeros_y (d_y), t_onehot (k)]
        "w1x": w1_full[:d_x],
        "w1t": w1_full[d_x + d_y:],
        "b1": b1,
        "wmu": wmu,
        "bmu": bmu,
        # W2 input order: [x (d_x), t_onehot (k), z (d_z)]
        "w2x": w2_full[:d_x],
        "w2t": w2_full[d_x:d_x + k],
        "w2z": w2_full[d_x + k:],
        "b2": b2,
        "w3": w3,
        "b3": b3,
    }


def reference_forward(x, t_onehot, params):
    """Pure-JAX f32 reference mirroring the PyTorch forward (no fusion)."""
    h1 = jnp.maximum(x @ params["w1x"] + t_onehot @ params["w1t"] + params["b1"], 0.0)
    z = h1 @ params["wmu"] + params["bmu"]
    h2 = jnp.maximum(
        x @ params["w2x"] + t_onehot @ params["w2t"] + z @ params["w2z"] + params["b2"],
        0.0,
    )
    return h2 @ params["w3"] + params["b3"]


if __name__ == "__main__":
    # Small shapes consistent with module defaults (k=2, d_z=16, hidden=64).
    d_x, d_y, k, d_z, hidden = 16, 4, 2, 16, 64
    key = jax.random.PRNGKey(0)
    kx, kt, kp = jax.random.split(key, 3)
    params = init_params(kp, d_x, d_y, k, d_z, hidden)
    prepped = prepare_params(params)   # one-time weight prep (hoisted out of forward)

    # bf16 MXU operands -> compare against the f32 reference at bf16-level tolerance.
    # B=8/10 exercise the single-tile (ragged) path; B=300 exercises a 2-step grid
    # (megacore split on v7x) plus lane padding.
    for B in (8, 10, 300):
        kxb, ktb = jax.random.split(jax.random.fold_in(kx, B))
        x = jax.random.normal(kxb, (B, d_x), jnp.float32)
        t = jax.random.randint(ktb, (B,), 0, k)              # integer treatment labels

        y = cevae_m_forward(x, t, prepped)
        jax.block_until_ready(y)

        t_onehot = jax.nn.one_hot(t, k, dtype=jnp.float32)
        y_ref = reference_forward(x, t_onehot, params)
        assert y.shape == (B, d_y)
        assert jnp.allclose(y, y_ref, atol=3e-2, rtol=3e-2), f"mismatch vs reference (B={B})"

    print("KERNEL_OK")
</pallas_src>

<mosaic_0001>
module attributes {stable_mosaic.version = 11 : i64} {
  func.func @_cevae_kernel(%arg0: i32, %arg1: memref<18x128xbf16, #tpu.memory_space<vmem>>, %arg2: memref<128x18xbf16, #tpu.memory_space<vmem>>, %arg3: memref<128x1xf32, #tpu.memory_space<vmem>>, %arg4: memref<64x64xbf16, #tpu.memory_space<vmem>>, %arg5: memref<8x64xbf16, #tpu.memory_space<vmem>>, %arg6: memref<8x1xf32, #tpu.memory_space<vmem>>, %arg7: memref<8x128xf32, #tpu.memory_space<vmem>>) attributes {dimension_semantics = [#tpu.dimension_semantics<parallel>], iteration_bounds = array<i64: 1>, scalar_prefetch = 0 : i64, scratch_operands = 0 : i64, tpu.core_type = #tpu.core_type<tc>, window_params = [{transform_indices = @transform_0, window_bounds = array<i64: 18, 128>}, {pipeline_mode = #tpu.pipeline_mode<synchronous>, transform_indices = @transform_1, window_bounds = array<i64: 128, 18>}, {pipeline_mode = #tpu.pipeline_mode<synchronous>, transform_indices = @transform_2, window_bounds = array<i64: 128, 1>}, {pipeline_mode = #tpu.pipeline_mode<synchronous>, transform_indices = @transform_3, window_bounds = array<i64: 64, 64>}, {pipeline_mode = #tpu.pipeline_mode<synchronous>, transform_indices = @transform_4, window_bounds = array<i64: 8, 64>}, {pipeline_mode = #tpu.pipeline_mode<synchronous>, transform_indices = @transform_5, window_bounds = array<i64: 8, 1>}, {transform_indices = @transform_6, window_bounds = array<i64: 8, 128>}]} {
    %c0 = arith.constant 0 : index
    %c0_0 = arith.constant 0 : index
    %0 = vector.load %arg1[%c0, %c0_0] : memref<18x128xbf16, #tpu.memory_space<vmem>>, vector<18x128xbf16>
    %c0_1 = arith.constant 0 : index
    %c0_2 = arith.constant 0 : index
    %1 = vector.load %arg2[%c0_1, %c0_2] : memref<128x18xbf16, #tpu.memory_space<vmem>>, vector<128x18xbf16>
    %cst = arith.constant dense<0.000000e+00> : vector<128x128xf32>
    %2 = tpu.matmul %1, %0, %cst {dimension_numbers = #tpu.dot_dimension_numbers<[1], [0], [0], [1], [0, 0, 1, 1], [], []>} : vector<128x18xbf16>, vector<18x128xbf16>, vector<128x128xf32> -> vector<128x128xf32>
    %c0_3 = arith.constant 0 : index
    %c0_4 = arith.constant 0 : index
    %3 = vector.load %arg3[%c0_3, %c0_4] : memref<128x1xf32, #tpu.memory_space<vmem>>, vector<128x1xf32>
    %4 = vector.broadcast %3 : vector<128x1xf32> to vector<128x128xf32>
    %5 = arith.addf %2, %4 : vector<128x128xf32>
    %6 = vector.extract_strided_slice %5 {offsets = [0, 0], sizes = [64, 128], strides = [1, 1]} : vector<128x128xf32> to vector<64x128xf32>
    %cst_5 = arith.constant 0.000000e+00 : f32
    %7 = vector.broadcast %cst_5 : f32 to vector<64x128xf32>
    %8 = arith.maximumf %6, %7 : vector<64x128xf32>
    %9 = vector.extract_strided_slice %5 {offsets = [64, 0], sizes = [64, 128], strides = [1, 1]} : vector<128x128xf32> to vector<64x128xf32>
    %c0_6 = arith.constant 0 : index
    %c0_7 = arith.constant 0 : index
    %10 = vector.load %arg4[%c0_6, %c0_7] : memref<64x64xbf16, #tpu.memory_space<vmem>>, vector<64x64xbf16>
    %11 = arith.truncf %8 : vector<64x128xf32> to vector<64x128xbf16>
    %cst_8 = arith.constant dense<0.000000e+00> : vector<64x128xf32>
    %12 = tpu.matmul %10, %11, %cst_8 {dimension_numbers = #tpu.dot_dimension_numbers<[1], [0], [0], [1], [0, 0, 1, 1], [], []>} : vector<64x64xbf16>, vector<64x128xbf16>, vector<64x128xf32> -> vector<64x128xf32>
    %13 = arith.addf %9, %12 : vector<64x128xf32>
    %cst_9 = arith.constant 0.000000e+00 : f32
    %14 = vector.broadcast %cst_9 : f32 to vector<64x128xf32>
    %15 = arith.maximumf %13, %14 : vector<64x128xf32>
    %c0_10 = arith.constant 0 : index
    %c0_11 = arith.constant 0 : index
    %16 = vector.load %arg5[%c0_10, %c0_11] : memref<8x64xbf16, #tpu.memory_space<vmem>>, vector<8x64xbf16>
    %17 = arith.truncf %15 : vector<64x128xf32> to vector<64x128xbf16>
    %cst_12 = arith.constant dense<0.000000e+00> : vector<8x128xf32>
    %18 = tpu.matmul %16, %17, %cst_12 {dimension_numbers = #tpu.dot_dimension_numbers<[1], [0], [0], [1], [0, 0, 1, 1], [], []>} : vector<8x64xbf16>, vector<64x128xbf16>, vector<8x128xf32> -> vector<8x128xf32>
    %c0_13 = arith.constant 0 : index
    %c0_14 = arith.constant 0 : index
    %19 = vector.load %arg6[%c0_13, %c0_14] : memref<8x1xf32, #tpu.memory_space<vmem>>, vector<8x1xf32>
    %20 = vector.broadcast %19 : vector<8x1xf32> to vector<8x128xf32>
    %21 = arith.addf %18, %20 : vector<8x128xf32>
    %c0_15 = arith.constant 0 : index
    %c0_16 = arith.constant 0 : index
    %22 = vector.load %arg7[%c0_15, %c0_16] : memref<8x128xf32, #tpu.memory_space<vmem>>, vector<8x128xf32>
    tpu.vector_store %arg7[%c0_15, %c0_16], %21 {strides = array<i32>} : memref<8x128xf32, #tpu.memory_space<vmem>>, vector<8x128xf32>,
    return
  }
  func.func @transform_0(%arg0: i32) -> (i32, i32) {
    %c0_i32 = arith.constant 0 : i32
    %c0_i32_0 = arith.constant 0 : i32
    return %c0_i32, %arg0 : i32, i32
  }
  func.func @transform_1(%arg0: i32) -> (i32, i32) {
    %c0_i32 = arith.constant 0 : i32
    %c0_i32_0 = arith.constant 0 : i32
    %c0_i32_1 = arith.constant 0 : i32
    return %c0_i32, %c0_i32_0 : i32, i32
  }
  func.func @transform_2(%arg0: i32) -> (i32, i32) {
    %c0_i32 = arith.constant 0 : i32
    %c0_i32_0 = arith.constant 0 : i32
    %c0_i32_1 = arith.constant 0 : i32
    return %c0_i32, %c0_i32_0 : i32, i32
  }
  func.func @transform_3(%arg0: i32) -> (i32, i32) {
    %c0_i32 = arith.constant 0 : i32
    %c0_i32_0 = arith.constant 0 : i32
    %c0_i32_1 = arith.constant 0 : i32
    return %c0_i32, %c0_i32_0 : i32, i32
  }
  func.func @transform_4(%arg0: i32) -> (i32, i32) {
    %c0_i32 = arith.constant 0 : i32
    %c0_i32_0 = arith.constant 0 : i32
    %c0_i32_1 = arith.constant 0 : i32
    return %c0_i32, %c0_i32_0 : i32, i32
  }
  func.func @transform_5(%arg0: i32) -> (i32, i32) {
    %c0_i32 = arith.constant 0 : i32
    %c0_i32_0 = arith.constant 0 : i32
    %c0_i32_1 = arith.constant 0 : i32
    return %c0_i32, %c0_i32_0 : i32, i32
  }
  func.func @transform_6(%arg0: i32) -> (i32, i32) {
    %c0_i32 = arith.constant 0 : i32
    %c0_i32_0 = arith.constant 0 : i32
    return %c0_i32, %arg0 : i32, i32
  }
}

</mosaic_0001>

<bundles_post_ra>
// kernel: tpu_custom_call.1
= control target key start
LH: loop header
LB: loop body
LE: loop exit
PB: predicated region body
PF: predicated region fallthrough
CT: control target
= control target key end

     0   :  { %vm214_vm0 = vcmask 1040384   ;;  %vm189_vm1 = vcmask 146432   ;;  %v682_v8 = vmov 0   ;;  %s842_s0 = inlined_call_operand.vmem [shape: bf16[18,128], index: 0, kind: input, shape index: {}]   ;;  %s843_s1 = inlined_call_operand.vmem [shape: bf16[128,18], index: 1, kind: input, shape index: {}]   ;;  %s844_s2 = inlined_call_operand.vmem [shape: f32[128,1], index: 2, kind: input, shape index: {}]   ;;  %s845_s3 = inlined_call_operand.vmem [shape: bf16[64,64], index: 3, kind: input, shape index: {}]   ;;  %s846_s4 = inlined_call_operand.vmem [shape: bf16[8,64], index: 4, kind: input, shape index: {}]   ;;  %s847_s5 = inlined_call_operand.vmem [shape: f32[8,1], index: 5, kind: input, shape index: {}]   ;;  %s848_s6 = inlined_call_operand.hbm [shape: f32[8,128], index: 6, kind: output, shape index: {}]  }
   0x1   :  { %v644_v0 = vld [vmem:[%s842_s0] sm:$0xff]   ;;  %v645_v1 = vld [vmem:[%s842_s0 + $0x8] ss:$0 sps:$4 sm:$0x11]   ;;  %v650_v7 = vld [vmem:[%s843_s1 + $0x10] sm:$0xff]   ;;  %642 = vset.pattern.permute.xlu0 %v682_v8  ;;  %643 = vset.pattern.permute.xlu1 %v682_v8 }
   0x2   :  { %v646_v2 = vld [vmem:[%s843_s1] sm:$0xff]   ;;  %568 = vmatprep.subr.bf16.mxu0 %v644_v0  ;;  %616 = vmatprep.subr.bf16.mxu1 %v644_v0  ;;  %v216_v4 = vsel %vm214_vm0, %v645_v1, 0  ;;  %v648_v5 = vld [vmem:[%s843_s1 + $0x8] sm:$0xff]   ;;  %v651_v9 = vld [vmem:[%s843_s1 + $0x30] sm:$0xff]  }
   0x3   :  { %v647_v3 = vld [vmem:[%s843_s1 + $0x20] sm:$0xff]   ;;  %569 = vmatpush3.bf16.msra.mxu0 %v644_v0  ;;  %618 = vmatpush3.bf16.msra.mxu1 %v644_v0  ;;  %v649_v6 = vld [vmem:[%s843_s1 + $0x28] sm:$0xff]   ;;  %v46_v11 = vld [vmem:[%s844_s2 + $0x10] sm:$0xff] }
   0x4   :  { %636 = vmatprep.subr.msk.bf16.mxu0 %vm214_vm0, %v645_v1  ;;  %637 = vmatprep.subr.msk.bf16.mxu1 %vm214_vm0, %v645_v1  ;;  %v44_v10 = vld [vmem:[%s844_s2] sm:$0xff]  ;;  %v45_v12 = vld [vmem:[%s844_s2 + $0x8] sm:$0xff]  ;;  %v47_v13 = vld [vmem:[%s844_s2 + $0x18] sm:$0xff] }
   0x5   :  { %572 = vmatprep.mubr.msk.bf16.mxu0 %vm189_vm1, %v646_v2  ;;  %580 = vmatprep.mubr.msk.bf16.mxu1 %vm189_vm1, %v647_v3  ;;  %v652_v14 = vld [vmem:[%s843_s1 + $0x18] sm:$0xff]   ;;  %v48_v16 = vld [vmem:[%s844_s2 + $0x20] sm:$0xff]  ;;  %v49_v17 = vld [vmem:[%s844_s2 + $0x28] sm:$0xff] }
   0x6   :  { %62 = vperm.xlu0 %642, %v44_v10   ;;  %72 = vperm.xlu1 %643, %v46_v11   ;;  %v653_v15 = vld [vmem:[%s843_s1 + $0x38] sm:$0xff]  }
   0x7   :  { %571 = vmatpush3.bf16.msra.mxu0 %v216_v4  ;;  %619 = vmatpush3.bf16.msra.mxu1 %v216_v4 }
   0xa   :  { %573 = vmatmul.mubr.msk.bf16.vlgmr.msra.gmra.mrb[0].mxu0 %vm189_vm1, %v648_v5  ;;  %581 = vmatmul.mubr.msk.bf16.vlgmr.msra.gmra.mrb[0].mxu1 %vm189_vm1, %v649_v6 }
   0xb   :  { %576 = vmatprep.mubr.msk.bf16.mxu0 %vm189_vm1, %v650_v7  ;;  %584 = vmatprep.mubr.msk.bf16.mxu1 %vm189_vm1, %v651_v9 }
   0xc   :  { %67 = vperm.xlu0 %642, %v45_v12   ;;  %77 = vperm.xlu1 %643, %v47_v13  }
  0x12   :  { %577 = vmatmul.mubr.msk.bf16.gmra.mrb[4].mxu0 %vm189_vm1, %v652_v14  ;;  %585 = vmatmul.mubr.msk.bf16.gmra.mrb[4].mxu1 %vm189_vm1, %v653_v15 }
  0x13   :  { %11 = vsyncpa [#allocation3], 0  ;;  %82 = vperm.xlu0 %642, %v48_v16   ;;  %87 = vperm.xlu1 %643, %v49_v17   ;;  %v50_v18 = vld [vmem:[%s844_s2 + $0x30] sm:$0xff]  ;;  %v51_v19 = vld [vmem:[%s844_s2 + $0x38] sm:$0xff]  ;;  %vm355_vm2 = vcmask 523264   ;;  %v683_v13 = vmov 0.0  }
  0x14   :  { %v52_v20 = vld [vmem:[%s844_s2 + $0x40] sm:$0xff]  ;;  %v53_v21 = vld [vmem:[%s844_s2 + $0x48] sm:$0xff]  ;;  %v54_v22 = vld [vmem:[%s844_s2 + $0x50] sm:$0xff]  ;;  %604 = vmatprep.subr.bf16.mxu1 %v683_v13  ;;  %vm684_vm3 = vmmov 0   ;;  %s685_s30 = smov [#allocation2]  }
  0x15   :  { %v55_v23 = vld [vmem:[%s844_s2 + $0x58] sm:$0xff]  ;;  %v56_v24 = vld [vmem:[%s844_s2 + $0x60] sm:$0xff]  ;;  %v57_v25 = vld [vmem:[%s844_s2 + $0x68] sm:$0xff]  ;;  %612 = vmatprep.mubr.msk.bf16.mxu1 %vm684_vm3, %v683_v13  ;;  %s510_s0 = sshll.u32 %s685_s30, 4  ;;  %s511_s0 = int_to_ptr.vmem [resolvable:$true] %s510_s0 }
  0x16   :  { %v58_v26 = vld [vmem:[%s844_s2 + $0x70] sm:$0xff]  ;;  %v59_v27 = vld [vmem:[%s844_s2 + $0x78] sm:$0xff]  ;;  %v454_v28 = vld [vmem:[%s847_s5] sm:$0xff]  ;;  %s658_s7 = scalar_lea.vmem %s511_s0, 128  ;;  %p663_p1 = scmp.lt.s32.totalorder %s511_s0, %s511_s0 }
  0x17   :  { %92 = vperm.xlu0 %642, %v50_v18   ;;  %97 = vperm.xlu1 %643, %v51_v19   ;;  %v654_v29 = vld [vmem:[%s845_s3] sm:$0xff]   ;;  %v655_v10 = vld [vmem:[%s845_s3 + $0x8] sm:$0xff]   ;;  %v656_v11 = vld [vmem:[%s845_s3 + $0x10] sm:$0xff]   ;;  %p659_p0 = scmp.ne.s32.totalorder %s511_s0, %s658_s7  ;;  %p664_p2 = scmp.lt.s32.totalorder %s658_s7, %s658_s7 }
  0x18   :  { %596 = vmatprep.mubr.msk.bf16.mxu0 %vm355_vm2, %v654_v29  ;;  %v657_v12 = vld [vmem:[%s845_s3 + $0x18] sm:$0xff]  }
  0x19   :  { %p665_p3 = por %p664_p2, %p663_p1 }
  0x1b   :  { %102 = vperm.xlu0 %642, %v52_v20   ;;  %107 = vperm.xlu1 %643, %v53_v21   ;;  %p666_p4 = pnand %p665_p3, %p659_p0 }
  0x1f   :  { %112 = vperm.xlu0 %642, %v54_v22   ;;  %117 = vperm.xlu1 %643, %v55_v23  }
  0x23   :  { %122 = vperm.xlu0 %642, %v56_v24   ;;  %127 = vperm.xlu1 %643, %v57_v25  }
  0x27   :  { %132 = vperm.xlu0 %642, %v58_v26   ;;  %137 = vperm.xlu1 %643, %v59_v27  }
  0x2b   :  { %457 = vperm.xlu0 %642, %v454_v28  }
  0x85   :  { %v63_v30 = vpop.permute.xlu0 %62  ;;  %v73_v31 = vpop.permute.xlu1 %72 }
  0x8b   :  { %v68_v32 = vpop.permute.xlu0 %67  ;;  %v78_v33 = vpop.permute.xlu1 %77 }
  0x92   :  { %v83_v34 = vpop.permute.xlu0 %82  ;;  %v88_v35 = vpop.permute.xlu1 %87 }
  0x96   :  { %v93_v52 = vpop.permute.xlu0 %92  ;;  %v98_v53 = vpop.permute.xlu1 %97 }
  0x9a   :  { %v103_v14 = vpop.permute.xlu0 %102  ;;  %v108_v15 = vpop.permute.xlu1 %107 }
  0x9e   :  { %v113_v16 = vpop.permute.xlu0 %112  ;;  %v118_v17 = vpop.permute.xlu1 %117 }
  0xa2   :  { %v123_v19 = vpop.permute.xlu0 %122  ;;  %v128_v25 = vpop.permute.xlu1 %127 }
  0xdd   :  { %v574_v36 = vpop.f32.mrb[0].mxu0  ;;  %v582_v37 = vpop.f32.mrb[0].mxu1 }
  0xde   :  { %v261_v38 = vadd.f32 %v574_v36, %v73_v31  ;;  %v252_v39 = vpop.f32.mrb[1].mxu0  ;;  %v284_v40 = vpop.f32.mrb[1].mxu1  ;;  %v293_v18 = vadd.f32 %v582_v37, %v113_v16 }
  0xdf   :  { %v253_v41 = vadd.f32 %v252_v39, %v63_v30  ;;  %v575_v42 = vpop.f32.mrb[2].mxu0  ;;  %v583_v43 = vpop.f32.mrb[2].mxu1  ;;  %v285_v20 = vadd.f32 %v284_v40, %v103_v14 }
  0xe0   :  { %v264_v44 = vadd.f32 %v575_v42, %v78_v33  ;;  %v255_v45 = vpop.f32.mrb[3].mxu0  ;;  %v287_v46 = vpop.f32.mrb[3].mxu1  ;;  %v317_v48 = vmax.f32 %v261_v38, 0.0  ;;  %v296_v22 = vadd.f32 %v583_v43, %v118_v17 }
  0xe1   :  { %v256_v47 = vadd.f32 %v255_v45, %v68_v32  ;;  %v315_v50 = vmax.f32 %v253_v41, 0.0  ;;  %v288_v26 = vadd.f32 %v287_v46, %v108_v15  ;;  %v138_v39 = vpop.permute.xlu1 %137 }
  0xe2   :  { %v318_v49 = vmax.f32 %v264_v44, 0.0 }
  0xe3   :  { %v316_v51 = vmax.f32 %v256_v47, 0.0 }
  0xe4   :  { %v332_v54 = vpack.c.bf16 %v318_v49, %v317_v48 }
  0xe5   :  { %v331_v55 = vpack.c.bf16 %v316_v51, %v315_v50  ;;  %v578_v56 = vpop.f32.mrb[4].mxu0  ;;  %v586_v57 = vpop.f32.mrb[4].mxu1 }
  0xe6   :  { %v277_v58 = vadd.f32 %v578_v56, %v93_v52  ;;  %v268_v59 = vpop.f32.mrb[5].mxu0  ;;  %v300_v60 = vpop.f32.mrb[5].mxu1 }
  0xe7   :  { %v269_v61 = vadd.f32 %v268_v59, %v83_v34  ;;  %v579_v62 = vpop.f32.mrb[6].mxu0  ;;  %v587_v63 = vpop.f32.mrb[6].mxu1  ;;  %588 = vmatprep.subr.bf16.mxu0 %v331_v55  ;;  %v301_v40 = vadd.f32 %v300_v60, %v123_v19 }
  0xe8   :  { %v280_v0 = vadd.f32 %v579_v62, %v98_v53  ;;  %v271_v1 = vpop.f32.mrb[7].mxu0  ;;  %v303_v2 = vpop.f32.mrb[7].mxu1  ;;  %589 = vmatpush3.bf16.msra.mxu0 %v331_v55  ;;  %v321_v4 = vmax.f32 %v277_v58, 0.0  ;;  %v312_v43 = vadd.f32 %v587_v63, %v138_v39  ;;  %v449_v58 = vld [vmem:[%s846_s4] sm:$0xf] }
  0xe9   :  { %v272_v3 = vadd.f32 %v271_v1, %v88_v35  ;;  %590 = vmatprep.subr.bf16.mxu0 %v332_v54  ;;  %v319_v6 = vmax.f32 %v269_v61, 0.0  ;;  %v133_v34 = vpop.permute.xlu0 %132  ;;  %v304_v46 = vadd.f32 %v303_v2, %v128_v25 }
  0xea   :  { %v322_v5 = vmax.f32 %v280_v0, 0.0  ;;  %v309_v38 = vadd.f32 %v586_v57, %v133_v34 }
  0xeb   :  { %v320_v7 = vmax.f32 %v272_v3, 0.0 }
  0xec   :  { %v334_v8 = vpack.c.bf16 %v322_v5, %v321_v4  ;;  %591 = vmatpush3.bf16.msra.mxu0 %v332_v54 }
  0xed   :  { %v333_v9 = vpack.c.bf16 %v320_v7, %v319_v6  ;;  %v458_v59 = vpop.permute.xlu0 %457 }
  0xef   :  { %592 = vmatprep.subr.bf16.mxu0 %v333_v9 }
  0xf0   :  { %593 = vmatpush3.bf16.msra.mxu0 %v333_v9 }
  0xf1   :  { %594 = vmatprep.subr.bf16.mxu0 %v334_v8 }
  0xf4   :  { %595 = vmatpush3.bf16.msra.mxu0 %v334_v8 }
  0xf7   :  { %597 = vmatmul.mubr.msk.bf16.vlgmr.msra.gmra.mrb[8].mxu0 %vm355_vm2, %v655_v10 }
  0xf8   :  { %600 = vmatprep.mubr.msk.bf16.mxu0 %vm355_vm2, %v656_v11 }
  0xff   :  { %601 = vmatmul.mubr.msk.bf16.gmra.mrb[12].mxu0 %vm355_vm2, %v657_v12 }
 0x1ca   :  { %v598_v21 = vpop.f32.mrb[8].mxu0 }
 0x1cb   :  { %v435_v23 = vadd.f32 %v598_v21, %v293_v18  ;;  %v402_v24 = vpop.f32.mrb[9].mxu0 }
 0x1cc   :  { %v433_v27 = vadd.f32 %v402_v24, %v285_v20  ;;  %v599_v28 = vpop.f32.mrb[10].mxu0 }
 0x1cd   :  { %v436_v29 = vadd.f32 %v599_v28, %v296_v22  ;;  %v405_v30 = vpop.f32.mrb[11].mxu0  ;;  %v443_v32 = vmax.f32 %v435_v23, 0.0 }
 0x1ce   :  { %v434_v31 = vadd.f32 %v405_v30, %v288_v26  ;;  %v441_v35 = vmax.f32 %v433_v27, 0.0 }
 0x1cf   :  { %v444_v33 = vmax.f32 %v436_v29, 0.0 }
 0x1d0   :  { %v442_v36 = vmax.f32 %v434_v31, 0.0 }
 0x1d1   :  { %v451_v37 = vpack.c.bf16 %v444_v33, %v443_v32 }
 0x1d2   :  { %v450_v41 = vpack.c.bf16 %v442_v36, %v441_v35  ;;  %v602_v42 = vpop.f32.mrb[12].mxu0 }
 0x1d3   :  { %v439_v44 = vadd.f32 %v602_v42, %v309_v38  ;;  %v418_v45 = vpop.f32.mrb[13].mxu0 }
 0x1d4   :  { %v437_v47 = vadd.f32 %v418_v45, %v301_v40  ;;  %v603_v48 = vpop.f32.mrb[14].mxu0  ;;  %605 = vmatpush3.bf16.msra.mxu1 %v450_v41 }
 0x1d5   :  { %v440_v49 = vadd.f32 %v603_v48, %v312_v43  ;;  %v421_v50 = vpop.f32.mrb[15].mxu0  ;;  %606 = vmatprep.subr.bf16.mxu1 %v683_v13  ;;  %v447_v52 = vmax.f32 %v439_v44, 0.0 }
 0x1d6   :  { %v438_v51 = vadd.f32 %v421_v50, %v304_v46  ;;  %v445_v54 = vmax.f32 %v437_v47, 0.0 }
 0x1d7   :  { %v448_v53 = vmax.f32 %v440_v49, 0.0 }
 0x1d8   :  { %v446_v55 = vmax.f32 %v438_v51, 0.0  ;;  %607 = vmatpush3.bf16.msra.mxu1 %v451_v37 }
 0x1d9   :  { %v453_v56 = vpack.c.bf16 %v448_v53, %v447_v52  ;;  %608 = vmatprep.subr.bf16.mxu1 %v683_v13 }
 0x1da   :  { %v452_v57 = vpack.c.bf16 %v446_v55, %v445_v54 }
 0x1dc   :  { %609 = vmatpush3.bf16.msra.mxu1 %v452_v57 }
 0x1dd   :  { %610 = vmatprep.subr.bf16.mxu1 %v683_v13 }
 0x1e0   :  { %611 = vmatpush3.bf16.msra.mxu1 %v453_v56 }
 0x1e3   :  { %613 = vmatmul.mubr.msk.bf16.vlgmr.msra.gmra.mrb[8].mxu1 %vm355_vm2, %v449_v58 }
 0x2b6   :  { %v497_v60 = vpop.f32.mrb[8].mxu1 }
 0x2b7   :  { %v498_v61 = vadd.f32 %v497_v60, %v458_v59  ;;  %v614_v62 = vpop.f32.mrb[9].mxu1 }
 0x2b8   :  { %v500_v63 = vpop.f32.mrb[10].mxu1 }
 0x2b9   :  { %503 = vst [vmem:[#allocation2] sm:$0xff] %v498_v61  ;;  %v615_v0 = vpop.f32.mrb[11].mxu1 }
 0x2ba   :  { %669 = shalt.err (!%p666_p4)
}
 0x2bb   :  { %s670_s9 = scalar_lea.hbm %s848_s6, 128 }
 0x2bc   :  { %p671_p5 = scmp.ne.s32.totalorder %s848_s6, %s670_s9  ;;  %p674_p6 = scmp.lt.u32.totalorder %s670_s9, %s848_s6 }
 0x2be   :  { %p676_p7 = pnand %p674_p6, %p671_p5 }
 0x2c0   :  { %679 = shalt.err (!%p676_p7)
}
 0x2c1   :  { %513 = dma.vmem_to_hbm [thread:$0]  %s511_s0, 128, %s848_s6, [#allocation3]  }
 0x2c2   :  { %680 = dma.done.wait [#allocation3], 128  }
 0x2c3   :  { %681 = vsyncadd [#allocation3], 4294967168 }
 0x2c4   :  { %517 = vsyncpa [#allocation3], 1 }

</bundles_post_ra>
